<compile_context>
chip_gen: v6e
topology: v6e:2x2x1
jax: 0.10.0
libtpu: 0.0.40
codegen_flags: <defaults>
</compile_context>

<pallas_src>
import functools

import jax
import jax.numpy as jnp
from jax.experimental import pallas as pl
from jax.experimental.pallas import tpu as pltpu


def _dice_partial_kernel(x_ref, t_ref, inter_ref, card_ref, *,
                         sub_rows, n_sub, valid_rows_last, mask_tail,
                         n_chunks, n_r):
    """One (r_tile, 128) slab of one (sample, chunk) per grid step.

    x_ref/t_ref        : (r_tile, 128) input slabs (leading dims squeezed)
    inter_ref/card_ref : (8, 128) f32 partial-sum outputs, resident across the
                         r axis (accumulators); finalized in the JAX wrapper.
    """
    c = pl.program_id(1)
    r = pl.program_id(2)

    @pl.when(r == 0)
    def _():
        inter_ref[...] = jnp.zeros_like(inter_ref)
        card_ref[...] = jnp.zeros_like(card_ref)

    def make_body(masked):
        def body(i, carry):
            inter, card = carry
            off = pl.multiple_of(i * sub_rows, sub_rows)
            x = x_ref[pl.ds(off, sub_rows), :].astype(jnp.float32)
            t = t_ref[pl.ds(off, sub_rows), :].astype(jnp.float32)
            if masked:
                # Only reached on the single ragged tile (gated below):
                # zero rows past the real row count (zeros are neutral for
                # both the product-sum and the add-sum).
                row_ids = jax.lax.broadcasted_iota(jnp.int32, (sub_rows, 128), 0)
                keep = (row_ids + off) < valid_rows_last
                x = jnp.where(keep, x, 0.0)
                t = jnp.where(keep, t, 0.0)
            xr = x.reshape(-1, 8, 128)
            tr = t.reshape(-1, 8, 128)
            inter = inter + jnp.sum(xr * tr, axis=0)
            card = card + jnp.sum(xr, axis=0) + jnp.sum(tr, axis=0)
            return inter, card
        return body

    def run(masked):
        init = (inter_ref[...], card_ref[...])
        inter, card = jax.lax.fori_loop(
            0, n_sub, make_body(masked), init, unroll=(n_sub <= 8))
        inter_ref[...] = inter
        card_ref[...] = card

    if mask_tail:
        # Only the very last tile of the last chunk can be ragged.
        is_ragged = jnp.logical_and(c == n_chunks - 1, r == n_r - 1)

        @pl.when(jnp.logical_not(is_ragged))
        def _():
            run(masked=False)

        @pl.when(is_ragged)
        def _():
            run(masked=True)
    else:
        run(masked=False)


def dice_loss(inputs, targets, smooth=1e-05, *, max_rows_per_tile=8192,
              n_chunks=None):
    """inputs, targets: (N, C, D, H, W) arrays.  Returns scalar loss."""
    assert inputs.shape == targets.shape
    N = inputs.shape[0]

    flat_x = inputs.reshape(N, -1)
    flat_t = targets.reshape(N, -1)
    L = flat_x.shape[1]

    # Lane tail: pad only if L is not a multiple of 128 (rare for real
    # volumes).  All row-count remainders are handled by the in-kernel mask,
    # so the common case has zero extra HBM traffic before the kernel.
    # TODO(synk): add an in-kernel lane mask so even L % 128 != 0 avoids the copy.
    pad = (-L) % 128
    if pad:
        flat_x = jnp.pad(flat_x, ((0, 0), (0, pad)))
        flat_t = jnp.pad(flat_t, ((0, 0), (0, pad)))
    R = (L + pad) // 128
    x3 = flat_x.reshape(N, R, 128)
    t3 = flat_t.reshape(N, R, 128)

    itemsize = jnp.dtype(inputs.dtype).itemsize
    scale = max(1, 4 // itemsize)      # 1 f32, 2 bf16, 4 int8/fp8
    pack = 8 * scale                   # sublane packing for this dtype
    sub_rows = 256 * scale             # ~128 KiB inner accumulation chunk

    # Tile rows: large DMA blocks (~4 MiB f32-equivalent per input block by
    # default), multiple of the dtype packing, and a multiple of sub_rows so
    # the inner fori_loop tiles the block exactly.
    r_tile = min(max_rows_per_tile * scale, R)
    r_tile = max(pack, (r_tile // pack) * pack)
    if r_tile > sub_rows:
        r_tile = (r_tile // sub_rows) * sub_rows
    else:
        sub_rows = r_tile
    n_sub = r_tile // sub_rows

    n_tiles = pl.cdiv(R, r_tile)
    mask_tail = (R % r_tile) != 0
    valid_rows_last = R - (n_tiles - 1) * r_tile

    # v7x megacore: for tiny batches, split the per-sample reduction into
    # parallel row-chunks so both TensorCores get work (harmless on v5e/v6e).
    if n_chunks is None:
        n_chunks = 2 if (N == 1 and n_tiles >= 2) else 1
    n_chunks = max(1, min(n_chunks, n_tiles))
    while n_chunks > 1 and n_tiles % n_chunks != 0:
        n_chunks -= 1
    n_r = n_tiles // n_chunks

    kernel = functools.partial(
        _dice_partial_kernel,
        sub_rows=sub_rows,
        n_sub=n_sub,
        valid_rows_last=valid_rows_last,
        mask_tail=mask_tail,
        n_chunks=n_chunks,
        n_r=n_r,
    )

    # 2 inputs x 2 pipeline buffers x block, plus headroom for outputs and
    # compiler-internal scratch.  This raises v5e's 16 MiB scoped default and
    # stays far below v7x's 64 MiB physical VMEM.
    block_bytes = r_tile * 128 * itemsize
    vmem_limit = int(min(4 * block_bytes + (8 << 20), 48 << 20))

    inter_out, card_out = pl.pallas_call(
        kernel,
        out_shape=(
            jax.ShapeDtypeStruct((N, n_chunks, 8, 128), jnp.float32),
            jax.ShapeDtypeStruct((N, n_chunks, 8, 128), jnp.float32),
        ),
        grid_spec=pltpu.PrefetchScalarGridSpec(
            num_scalar_prefetch=0,
            grid=(N, n_chunks, n_r),
            in_specs=[
                pl.BlockSpec((None, r_tile, 128),
                             lambda n, c, r: (n, c * n_r + r, 0)),
                pl.BlockSpec((None, r_tile, 128),
                             lambda n, c, r: (n, c * n_r + r, 0)),
            ],
            out_specs=[
                pl.BlockSpec((None, None, 8, 128), lambda n, c, r: (n, c, 0, 0)),
                pl.BlockSpec((None, None, 8, 128), lambda n, c, r: (n, c, 0, 0)),
            ],
        ),
        compiler_params=pltpu.CompilerParams(
            # batch and chunk axes are independent (per-(n,c) outputs);
            # r is the sequential reduction axis.
            dimension_semantics=("parallel", "parallel", "arbitrary"),
            vmem_limit_bytes=vmem_limit,
        ),
    )(x3, t3)

    inter = inter_out.sum(axis=(1, 2, 3))     # (N,)
    card = card_out.sum(axis=(1, 2, 3))       # (N,)
    dice = (2.0 * inter + smooth) / (card + smooth)
    return 1.0 - jnp.mean(dice)


def _dice_loss_ref(inputs, targets, smooth=1e-05):
    inputs = inputs.astype(jnp.float32)
    targets = targets.astype(jnp.float32)
    intersections = (inputs * targets).sum(axis=(2, 3, 4))
    cardinalities = (inputs + targets).sum(axis=(2, 3, 4))
    dice = ((2.0 * intersections.sum(axis=1) + smooth)
            / (cardinalities.sum(axis=1) + smooth)).mean()
    return 1.0 - dice


if __name__ == "__main__":
    key = jax.random.PRNGKey(0)
    k1, k2, k3, k4 = jax.random.split(key, 4)

    # Small 5-D shapes consistent with sum(dim=[2,3,4]): (N, C, D, H, W)
    N, C, D, H, W = 2, 4, 8, 16, 16
    inputs = jax.nn.sigmoid(jax.random.normal(k1, (N, C, D, H, W), jnp.float32))
    targets = (jax.random.uniform(k2, (N, C, D, H, W)) > 0.5).astype(jnp.float32)
    ref = _dice_loss_ref(inputs, targets)

    # 1) default tiling (single r-tile per sample at this small size)
    loss = jax.block_until_ready(jax.jit(dice_loss)(inputs, targets))
    assert jnp.allclose(loss, ref, rtol=1e-5, atol=1e-5), (loss, ref)

    # 2) force the multi-tile accumulation path (R=64 rows -> 4 tiles of 16)
    loss_tiled = jax.block_until_ready(
        jax.jit(functools.partial(dice_loss, max_rows_per_tile=16))(inputs, targets))
    assert jnp.allclose(loss_tiled, ref, rtol=1e-5, atol=1e-5), (loss_tiled, ref)

    # 3) force the gated ragged-last-tile path (R=64, tile=40 -> 24-row tail)
    loss_ragged = jax.block_until_ready(
        jax.jit(functools.partial(dice_loss, max_rows_per_tile=40))(inputs, targets))
    assert jnp.allclose(loss_ragged, ref, rtol=1e-5, atol=1e-5), (loss_ragged, ref)

    # 4) force the parallel row-chunk split (4 tiles -> 2 chunks x 2 tiles)
    loss_chunked = jax.block_until_ready(
        jax.jit(functools.partial(dice_loss, max_rows_per_tile=16, n_chunks=2))(
            inputs, targets))
    assert jnp.allclose(loss_chunked, ref, rtol=1e-5, atol=1e-5), (loss_chunked, ref)

    # 5) bf16 inputs (exercises the dtype-packing / in-kernel f32 cast path)
    inputs_bf = inputs.astype(jnp.bfloat16)
    targets_bf = targets.astype(jnp.bfloat16)
    ref_bf = _dice_loss_ref(inputs_bf, targets_bf)
    loss_bf = jax.block_until_ready(jax.jit(dice_loss)(inputs_bf, targets_bf))
    assert jnp.allclose(loss_bf, ref_bf, rtol=1e-4, atol=1e-4), (loss_bf, ref_bf)

    # 6) N=1, larger volume: exercises fori_loop sub-slicing (n_sub>1) and the
    #    automatic v7x chunk split when forced to 2 tiles.
    inputs2 = jax.nn.sigmoid(jax.random.normal(k3, (1, 4, 16, 32, 32), jnp.float32))
    targets2 = (jax.random.uniform(k4, (1, 4, 16, 32, 32)) > 0.5).astype(jnp.float32)
    ref2 = _dice_loss_ref(inputs2, targets2)
    loss2 = jax.block_until_ready(jax.jit(dice_loss)(inputs2, targets2))
    assert jnp.allclose(loss2, ref2, rtol=1e-5, atol=1e-5), (loss2, ref2)
    loss2_chunk = jax.block_until_ready(
        jax.jit(functools.partial(dice_loss, max_rows_per_tile=300))(inputs2, targets2))
    assert jnp.allclose(loss2_chunk, ref2, rtol=1e-5, atol=1e-5), (loss2_chunk, ref2)

    print("KERNEL_OK")
</pallas_src>

<mosaic_0001>
module attributes {stable_mosaic.version = 11 : i64} {
  func.func @_dice_partial_kernel(%arg0: i32, %arg1: i32, %arg2: i32, %arg3: memref<1x64x128xf32, #tpu.memory_space<vmem>>, %arg4: memref<1x64x128xf32, #tpu.memory_space<vmem>>, %arg5: memref<1x1x8x128xf32, #tpu.memory_space<vmem>>, %arg6: memref<1x1x8x128xf32, #tpu.memory_space<vmem>>) attributes {dimension_semantics = [#tpu.dimension_semantics<parallel>, #tpu.dimension_semantics<parallel>, #tpu.dimension_semantics<arbitrary>], iteration_bounds = array<i64: 2, 1, 1>, scalar_prefetch = 0 : i64, scratch_operands = 0 : i64, tpu.core_type = #tpu.core_type<tc>, window_params = [{transform_indices = @transform_0, window_bounds = array<i64: 1, 64, 128>}, {transform_indices = @transform_1, window_bounds = array<i64: 1, 64, 128>}, {transform_indices = @transform_2, window_bounds = array<i64: 1, 1, 8, 128>}, {transform_indices = @transform_3, window_bounds = array<i64: 1, 1, 8, 128>}]} {
    %c0_i32 = arith.constant 0 : i32
    %0 = arith.cmpi eq, %arg2, %c0_i32 : i32
    %1 = arith.extui %0 : i1 to i32
    %c0_i32_0 = arith.constant 0 : i32
    %2 = arith.cmpi ne, %1, %c0_i32_0 : i32
    scf.if %2 {
      %cst_23 = arith.constant 0.000000e+00 : f32
      %30 = vector.broadcast %cst_23 : f32 to vector<8x128xf32>
      %c0_24 = arith.constant 0 : index
      %c0_25 = arith.constant 0 : index
      %c0_26 = arith.constant 0 : index
      %c0_27 = arith.constant 0 : index
      %31 = vector.load %arg5[%c0_24, %c0_25, %c0_26, %c0_27] : memref<1x1x8x128xf32, #tpu.memory_space<vmem>>, vector<1x1x8x128xf32>
      %32 = vector.shape_cast %31 : vector<1x1x8x128xf32> to vector<8x128xf32>
      %33 = vector.shape_cast %30 : vector<8x128xf32> to vector<1x1x8x128xf32>
      tpu.vector_store %arg5[%c0_24, %c0_25, %c0_26, %c0_27], %33 {strides = array<i32>} : memref<1x1x8x128xf32, #tpu.memory_space<vmem>>, vector<1x1x8x128xf32>,
      %cst_28 = arith.constant 0.000000e+00 : f32
      %34 = vector.broadcast %cst_28 : f32 to vector<8x128xf32>
      %c0_29 = arith.constant 0 : index
      %c0_30 = arith.constant 0 : index
      %c0_31 = arith.constant 0 : index
      %c0_32 = arith.constant 0 : index
      %35 = vector.load %arg6[%c0_29, %c0_30, %c0_31, %c0_32] : memref<1x1x8x128xf32, #tpu.memory_space<vmem>>, vector<1x1x8x128xf32>
      %36 = vector.shape_cast %35 : vector<1x1x8x128xf32> to vector<8x128xf32>
      %37 = vector.shape_cast %34 : vector<8x128xf32> to vector<1x1x8x128xf32>
      tpu.vector_store %arg6[%c0_29, %c0_30, %c0_31, %c0_32], %37 {strides = array<i32>} : memref<1x1x8x128xf32, #tpu.memory_space<vmem>>, vector<1x1x8x128xf32>,
    } else {
    }
    %c0 = arith.constant 0 : index
    %c0_1 = arith.constant 0 : index
    %c0_2 = arith.constant 0 : index
    %c0_3 = arith.constant 0 : index
    %3 = vector.load %arg5[%c0, %c0_1, %c0_2, %c0_3] : memref<1x1x8x128xf32, #tpu.memory_space<vmem>>, vector<1x1x8x128xf32>
    %4 = vector.shape_cast %3 : vector<1x1x8x128xf32> to vector<8x128xf32>
    %c0_4 = arith.constant 0 : index
    %c0_5 = arith.constant 0 : index
    %c0_6 = arith.constant 0 : index
    %c0_7 = arith.constant 0 : index
    %5 = vector.load %arg6[%c0_4, %c0_5, %c0_6, %c0_7] : memref<1x1x8x128xf32, #tpu.memory_space<vmem>>, vector<1x1x8x128xf32>
    %6 = vector.shape_cast %5 : vector<1x1x8x128xf32> to vector<8x128xf32>
    %c0_i32_8 = arith.constant 0 : i32
    %c64_i32 = arith.constant 64 : i32
    %7 = arith.muli %c0_i32_8, %c64_i32 : i32
    %8 = tpu.assume_multiple %7, 64 : i32
    %c0_9 = arith.constant 0 : index
    %9 = arith.index_cast %8 : i32 to index
    %c0_10 = arith.constant 0 : index
    %10 = vector.load %arg3[%c0_9, %9, %c0_10] : memref<1x64x128xf32, #tpu.memory_space<vmem>>, vector<1x64x128xf32>
    %11 = vector.shape_cast %10 : vector<1x64x128xf32> to vector<64x128xf32>
    %c0_11 = arith.constant 0 : index
    %12 = arith.index_cast %8 : i32 to index
    %c0_12 = arith.constant 0 : index
    %13 = vector.load %arg4[%c0_11, %12, %c0_12] : memref<1x64x128xf32, #tpu.memory_space<vmem>>, vector<1x64x128xf32>
    %14 = vector.shape_cast %13 : vector<1x64x128xf32> to vector<64x128xf32>
    %15 = vector.shape_cast %11 : vector<64x128xf32> to vector<8x8x128xf32>
    %16 = vector.shape_cast %14 : vector<64x128xf32> to vector<8x8x128xf32>
    %17 = arith.mulf %15, %16 : vector<8x8x128xf32>
    %cst = arith.constant dense<0.000000e+00> : vector<8x128xf32>
    %18 = vector.multi_reduction <add>, %17, %cst [0] : vector<8x8x128xf32> to vector<8x128xf32>
    %19 = arith.addf %4, %18 : vector<8x128xf32>
    %cst_13 = arith.constant dense<0.000000e+00> : vector<8x128xf32>
    %20 = vector.multi_reduction <add>, %15, %cst_13 [0] : vector<8x8x128xf32> to vector<8x128xf32>
    %21 = arith.addf %6, %20 : vector<8x128xf32>
    %cst_14 = arith.constant dense<0.000000e+00> : vector<8x128xf32>
    %22 = vector.multi_reduction <add>, %16, %cst_14 [0] : vector<8x8x128xf32> to vector<8x128xf32>
    %23 = arith.addf %21, %22 : vector<8x128xf32>
    %c1_i32 = arith.constant 1 : i32
    %c0_15 = arith.constant 0 : index
    %c0_16 = arith.constant 0 : index
    %c0_17 = arith.constant 0 : index
    %c0_18 = arith.constant 0 : index
    %24 = vector.load %arg5[%c0_15, %c0_16, %c0_17, %c0_18] : memref<1x1x8x128xf32, #tpu.memory_space<vmem>>, vector<1x1x8x128xf32>
    %25 = vector.shape_cast %24 : vector<1x1x8x128xf32> to vector<8x128xf32>
    %26 = vector.shape_cast %19 : vector<8x128xf32> to vector<1x1x8x128xf32>
    tpu.vector_store %arg5[%c0_15, %c0_16, %c0_17, %c0_18], %26 {strides = array<i32>} : memref<1x1x8x128xf32, #tpu.memory_space<vmem>>, vector<1x1x8x128xf32>,
    %c0_19 = arith.constant 0 : index
    %c0_20 = arith.constant 0 : index
    %c0_21 = arith.constant 0 : index
    %c0_22 = arith.constant 0 : index
    %27 = vector.load %arg6[%c0_19, %c0_20, %c0_21, %c0_22] : memref<1x1x8x128xf32, #tpu.memory_space<vmem>>, vector<1x1x8x128xf32>
    %28 = vector.shape_cast %27 : vector<1x1x8x128xf32> to vector<8x128xf32>
    %29 = vector.shape_cast %23 : vector<8x128xf32> to vector<1x1x8x128xf32>
    tpu.vector_store %arg6[%c0_19, %c0_20, %c0_21, %c0_22], %29 {strides = array<i32>} : memref<1x1x8x128xf32, #tpu.memory_space<vmem>>, vector<1x1x8x128xf32>,
    return
  }
  func.func @transform_0(%arg0: i32, %arg1: i32, %arg2: i32) -> (i32, i32, i32) {
    %c1_i32 = arith.constant 1 : i32
    %0 = arith.muli %arg1, %c1_i32 : i32
    %1 = arith.addi %0, %arg2 : i32
    %c0_i32 = arith.constant 0 : i32
    %c0_i32_0 = arith.constant 0 : i32
    return %arg0, %1, %c0_i32 : i32, i32, i32
  }
  func.func @transform_1(%arg0: i32, %arg1: i32, %arg2: i32) -> (i32, i32, i32) {
    %c1_i32 = arith.constant 1 : i32
    %0 = arith.muli %arg1, %c1_i32 : i32
    %1 = arith.addi %0, %arg2 : i32
    %c0_i32 = arith.constant 0 : i32
    %c0_i32_0 = arith.constant 0 : i32
    return %arg0, %1, %c0_i32 : i32, i32, i32
  }
  func.func @transform_2(%arg0: i32, %arg1: i32, %arg2: i32) -> (i32, i32, i32, i32) {
    %c0_i32 = arith.constant 0 : i32
    %c0_i32_0 = arith.constant 0 : i32
    %c0_i32_1 = arith.constant 0 : i32
    return %arg0, %arg1, %c0_i32, %c0_i32_0 : i32, i32, i32, i32
  }
  func.func @transform_3(%arg0: i32, %arg1: i32, %arg2: i32) -> (i32, i32, i32, i32) {
    %c0_i32 = arith.constant 0 : i32
    %c0_i32_0 = arith.constant 0 : i32
    %c0_i32_1 = arith.constant 0 : i32
    return %arg0, %arg1, %c0_i32, %c0_i32_0 : i32, i32, i32, i32
  }
}

</mosaic_0001>

<bundles_post_ra>
// kernel: dice_loss.1
= control target key start
LH: loop header
LB: loop body
LE: loop exit
PB: predicated region body
PF: predicated region fallthrough
CT: control target
= control target key end

     0   :  { %s562_s12 = smov 0   ;;  %s564_s13 = smov 0   ;;  %s625_s0 = inlined_call_operand.vmem [shape: f32[2,64,128], index: 0, kind: input, shape index: {}]   ;;  %s626_s1 = inlined_call_operand.vmem [shape: f32[2,64,128], index: 1, kind: input, shape index: {}]   ;;  %s627_s2 = inlined_call_operand.vmem [shape: f32[2,1,8,128], index: 2, kind: output, shape index: {0}]   ;;  %s628_s3 = inlined_call_operand.vmem [shape: f32[2,1,8,128], index: 3, kind: output, shape index: {1}]  }
   0x1   :  { %s566_s14 = smov 0  }
   0x2 LB: > { %s33_s15 = sadd.s32 1, %s536_s13  ;;  %p482_p0 = scmp.ge.s32.totalorder %s540_s14, 1  ;;  %s540_s14 = sphi %s566_s14, %s14_s14   ;;  %s536_s13 = sphi %s564_s13, %s630_s13   ;;  %s532_s12 = sphi %s562_s12, %s629_s12  }
   0x3   : > { %p35_p1 = scmp.ge.s32.totalorder %s33_s15, 2  ;;  %p195_p2 = scmp.lt.s32.totalorder %s540_s14, 3 }
   0x5   : > { %s632_s15 = smov (%p35_p1, %s33_s15), 0  ;;  %p196_p3 = pnand %p482_p0, %p195_p2 }
   0x6   : > { %p245_p4 = scmp.lt.s32.totalorder (!%p196_p3), %s532_s12, 1 }
   0x7   : > { %199 = sbr.rel (%p196_p3) target bundleno = 34 (0x22), region = 28 }
   0xc   : > { %s634_s12 = smov (!%p245_p4, %s532_s12), 1 }
   0xd   : > { %s491_s16 = sshll.u32 %s634_s12, 6  ;;  %s487_s23 = sshll.u32 %s634_s12, 3 }
   0xe   : > { %s586_s19 = scalar_lea.vmem %s625_s0, %s491_s16  ;;  %s591_s22 = scalar_lea.vmem %s626_s1, %s491_s16 }
   0xf   : > { %v289_v0 = vld [vmem:[%s586_s19] sm:$0xff]  ;;  %v290_v1 = vld [vmem:[%s586_s19 + $0x8] sm:$0xff]  ;;  %v291_v2 = vld [vmem:[%s586_s19 + $0x10] sm:$0xff]  ;;  %s280_s26 = scalar_lea.vmem %s628_s3, %s487_s23  ;;  %s273_s29 = scalar_lea.vmem %s627_s2, %s487_s23 }
  0x10   : > { %v321_v3 = vadd.f32 %v290_v1, %v289_v0  ;;  %v292_v4 = vld [vmem:[%s586_s19 + $0x18] sm:$0xff]  ;;  %v297_v5 = vld [vmem:[%s591_s22] sm:$0xff]  ;;  %v298_v6 = vld [vmem:[%s591_s22 + $0x8] sm:$0xff] }
  0x11   : > { %v299_v7 = vld [vmem:[%s591_s22 + $0x10] sm:$0xff]  ;;  %v300_v8 = vld [vmem:[%s591_s22 + $0x18] sm:$0xff]  ;;  %v305_v9 = vmul.f32 %v297_v5, %v289_v0  ;;  %v293_v11 = vld [vmem:[%s586_s19 + $0x20] sm:$0xff]  ;;  %v306_v12 = vmul.f32 %v298_v6, %v290_v1  ;;  %v329_v14 = vadd.f32 %v298_v6, %v297_v5 }
  0x12   : > { %v322_v10 = vadd.f32 %v321_v3, %v291_v2  ;;  %v307_v13 = vmul.f32 %v299_v7, %v291_v2  ;;  %v301_v15 = vld [vmem:[%s591_s22 + $0x20] sm:$0xff]  ;;  %v294_v17 = vld [vmem:[%s586_s19 + $0x28] sm:$0xff]  ;;  %v308_v18 = vmul.f32 %v300_v8, %v292_v4  ;;  %v295_v23 = vld [vmem:[%s586_s19 + $0x30] sm:$0xff] }
  0x13   : > { %v313_v19 = vadd.f32 %v306_v12, %v305_v9  ;;  %v330_v20 = vadd.f32 %v329_v14, %v299_v7  ;;  %v302_v21 = vld [vmem:[%s591_s22 + $0x28] sm:$0xff]  ;;  %v309_v24 = vmul.f32 %v301_v15, %v293_v11  ;;  %v303_v27 = vld [vmem:[%s591_s22 + $0x30] sm:$0xff]  ;;  %v296_v29 = vld [vmem:[%s586_s19 + $0x38] sm:$0xff] }
  0x14   : > { %v323_v16 = vadd.f32 %v322_v10, %v292_v4  ;;  %v310_v30 = vmul.f32 %v302_v21, %v294_v17  ;;  %v304_v33 = vld [vmem:[%s591_s22 + $0x38] sm:$0xff]  ;;  %v311_v35 = vmul.f32 %v303_v27, %v295_v23 }
  0x15   : > { %v314_v25 = vadd.f32 %v313_v19, %v307_v13  ;;  %v331_v26 = vadd.f32 %v330_v20, %v300_v8  ;;  %v312_v39 = vmul.f32 %v304_v33, %v296_v29 }
  0x16   : > { %v324_v22 = vadd.f32 %v323_v16, %v293_v11 }
  0x17   : > { %v315_v31 = vadd.f32 %v314_v25, %v308_v18  ;;  %v332_v32 = vadd.f32 %v331_v26, %v301_v15 }
  0x18   : > { %v325_v28 = vadd.f32 %v324_v22, %v294_v17 }
  0x19   : > { %v316_v36 = vadd.f32 %v315_v31, %v309_v24  ;;  %v333_v37 = vadd.f32 %v332_v32, %v302_v21 }
  0x1a   : > { %v326_v34 = vadd.f32 %v325_v28, %v295_v23 }
  0x1b   : > { %v317_v40 = vadd.f32 %v316_v36, %v310_v30  ;;  %v334_v41 = vadd.f32 %v333_v37, %v303_v27 }
  0x1c   : > { %v327_v38 = vadd.f32 %v326_v34, %v296_v29 }
  0x1d   : > { %v318_v42 = vadd.f32 %v317_v40, %v311_v35  ;;  %v335_v43 = vadd.f32 %v334_v41, %v304_v33 }
  0x1f   : > { %v319_v44 = vadd.f32 %v318_v42, %v312_v39  ;;  %v336_v45 = vadd.f32 %v335_v43, %v327_v38 }
  0x21   : > { %338 = vst [vmem:[%s280_s26] sm:$0xff] %v336_v45  ;;  %337 = vst [vmem:[%s273_s29] sm:$0xff] %v319_v44 }
  0x22 PF: > { %s14_s14 = sadd.s32 1, %s540_s14   ;;  %s629_s12 = smov %s536_s13 }
  0x23   : > { %p11_p5 = scmp.ge.s32.totalorder %s14_s14, 4   ;;  %s630_s13 = smov %s632_s15 }
  0x25   :  { %13 = sbr.rel (!%p11_p5) target bundleno = 2 (0x2), region = 77 }

</bundles_post_ra>
